<compile_context>
chip_gen: v5e
topology: v5e:2x2
jax: 0.10.0
libtpu: 0.0.40
codegen_flags: <defaults>
</compile_context>

<pallas_src>
import jax
import jax.numpy as jnp
from jax.experimental import pallas as pl
from jax.experimental.pallas import tpu as pltpu


def _round_up(x, m):
    return (x + m - 1) // m * m


def _make_xv_kernel(use_mxu):
    def kernel(alpha_ref, di_ref, s_ref, v_ref, htx_ref, hth_ref,
               s_out_ref, v_out_ref):
        # alpha_ref: scalar-prefetch SMEM arg, [alpha1, alpha2]
        a1 = alpha_ref[0]
        a2 = alpha_ref[1]

        s = s_ref[...].astype(jnp.float32)      # (b_blk, N) lane-dense rows
        v = v_ref[...].astype(jnp.float32)
        htx = htx_ref[...].astype(jnp.float32)

        if use_mxu:
            # Batched MXU matmuls contracting over the matrices' LAST dim
            # (same pattern as flash-attention's 'bqd,bkd->bqk'), so the
            # untransposed Di / HtH blocks are used directly:
            #   (row contracted against M's last dim)[i] == (M @ col)[i].
            s3 = s[:, None, :]                                   # (b, 1, N)
            hths = jnp.einsum('bkj,bij->bki', s3, hth_ref[...],
                              preferred_element_type=jnp.float32)
            r3 = htx[:, None, :] - hths
            dir3 = jnp.einsum('bkj,bij->bki', r3, di_ref[...],
                              preferred_element_type=jnp.float32)
            dir_ = dir3[:, 0, :]                                 # (b, N)
        else:
            # Small-N path: a (1,N)x(N,N) matvec would waste the MXU and pay
            # push/pop latency per batch.  Broadcast the row vector across
            # sublanes of the untransposed matrix block, multiply on the VPU
            # and reduce over the lane (contraction) axis.
            hth = hth_ref[...].astype(jnp.float32)
            di = di_ref[...].astype(jnp.float32)
            hths = jnp.sum(hth * s[:, None, :], axis=-1)         # (b, N)
            r = htx - hths
            dir_ = jnp.sum(di * r[:, None, :], axis=-1)          # (b, N)

        z = s + dir_ + a1 * v
        v_out_ref[...] = dir_.astype(v_out_ref.dtype)
        s_out_ref[...] = ((1.0 - a2) * z + a2 * s).astype(s_out_ref.dtype)

    return kernel


def _tpu_vmem_and_cores():
    """Per-core VMEM capacity and TensorCore count (conservative fallbacks)."""
    cap = 64 * 1024 * 1024          # safe on v5e / v6e / v7x
    cores = 1
    try:
        info = pltpu.get_tpu_info()
        cap_attr = getattr(info, "vmem_capacity_bytes", None)
        if cap_attr:
            cap = int(cap_attr)
        for attr in ("num_cores", "num_tensorcores", "core_count"):
            val = getattr(info, attr, None)
            if isinstance(val, int) and val > 0:
                cores = val
                break
    except Exception:
        pass
    return cap, cores


def _choose_batch_block(B, N, mat_itemsize, budget_bytes, num_cores):
    # Padded (8,128)-tile, double-buffered VMEM footprint per batch element.
    pn_lane = _round_up(N, 128)
    pn_sub = _round_up(N, 8)
    mat_bytes = 2 * 2 * pn_sub * pn_lane * mat_itemsize   # Di + HtH, 2 buffers
    vec_bytes = 2 * 7 * pn_lane * 4                       # 5 in + 2 out vectors
    per_batch = mat_bytes + vec_bytes
    b = max(1, int(budget_bytes) // per_batch)
    if num_cores >= 2 and B >= num_cores:
        # Keep >=1 grid step per TensorCore so the "parallel" axis can shard
        # (v7x); no-op / skipped on single-TC v5e/v6e.
        b = min(b, pl.cdiv(B, num_cores))
    if b >= B:
        return B
    # The (b_blk, N) vector blocks put b_blk on the sublane axis: keep it a
    # multiple of 8 (or the full batch).  A partial final block is fine.
    b = max(8, (b // 8) * 8)
    # TODO(synk): for huge N where even one batch's matrices exceed VMEM,
    # an N-tiled accumulation kernel would be needed; not handled here.
    return min(b, B)


def xv_forward(Di, s, v, Htx, HtH, alpha1, alpha2):
    B, N, K = s.shape
    assert K == 1
    assert Di.shape == (B, N, N) and HtH.shape == (B, N, N)
    assert v.shape == (B, N, 1) and Htx.shape == (B, N, 1)

    out_dtype = s.dtype

    # (B, N, 1) -> (B, N) is a free squeeze (no copy, no transpose).  The
    # matrices are passed through untouched (no swapaxes / astype), so XLA
    # never materializes extra HBM copies of the dominant tensors.
    s2 = jnp.reshape(s, (B, N))
    v2 = jnp.reshape(v, (B, N))
    htx2 = jnp.reshape(Htx, (B, N))

    alphas = jnp.asarray([alpha1, alpha2], dtype=jnp.float32)

    vmem_cap, num_cores = _tpu_vmem_and_cores()
    vmem_budget = int(vmem_cap * 0.72)      # block-sizing budget
    vmem_limit = int(vmem_cap * 0.90)       # Mosaic scoped-VMEM limit

    mat_itemsize = jnp.dtype(Di.dtype).itemsize
    vec_itemsize = jnp.dtype(s.dtype).itemsize
    b_blk = _choose_batch_block(B, N, mat_itemsize, vmem_budget, num_cores)
    grid = (pl.cdiv(B, b_blk),)

    mat_spec = pl.BlockSpec((b_blk, N, N), lambda b, *_: (b, 0, 0))
    vec_spec = pl.BlockSpec((b_blk, N), lambda b, *_: (b, 0))

    grid_spec = pltpu.PrefetchScalarGridSpec(
        num_scalar_prefetch=1,                       # alphas -> SMEM
        grid=grid,
        in_specs=[mat_spec, vec_spec, vec_spec, vec_spec, mat_spec],
        out_specs=[vec_spec, vec_spec],
    )

    cost = pl.CostEstimate(
        flops=4 * B * N * N + 6 * B * N,
        transcendentals=0,
        bytes_accessed=(2 * B * N * N * mat_itemsize
                        + 3 * B * N * vec_itemsize
                        + 2 * B * N * jnp.dtype(out_dtype).itemsize),
    )

    kernel = _make_xv_kernel(use_mxu=(N >= 128))

    s_new, v_new = pl.pallas_call(
        kernel,
        out_shape=(jax.ShapeDtypeStruct((B, N), out_dtype),
                   jax.ShapeDtypeStruct((B, N), out_dtype)),
        grid_spec=grid_spec,
        compiler_params=pltpu.CompilerParams(
            dimension_semantics=("parallel",),
            vmem_limit_bytes=vmem_limit),
        cost_estimate=cost,
    )(alphas, Di, s2, v2, htx2, HtH)

    # Back to the module's (B, N, 1) column layout (free reshape).
    return jnp.reshape(s_new, (B, N, 1)), jnp.reshape(v_new, (B, N, 1))


def xv_reference(Di, s, v, Htx, HtH, alpha1, alpha2):
    HtHs = jnp.einsum("bij,bjk->bik", HtH, s, precision="highest")
    dir_ = jnp.einsum("bij,bjk->bik", Di, Htx - HtHs, precision="highest")
    z = s + dir_ + alpha1 * v
    v_new = dir_
    s_new = (1.0 - alpha2) * z + alpha2 * s
    return s_new, v_new


if __name__ == "__main__":
    key = jax.random.PRNGKey(0)
    kA1, kData = jax.random.split(key)

    # Deterministic parameter init matching the nn.Module __init__:
    #   alpha1 ~ torch.rand(1)  -> deterministic uniform draw here
    #   alpha2 = 0.5
    alpha1 = float(jax.random.uniform(kA1, ()))
    alpha2 = 0.5

    # Exercise both compute paths: small-N VPU path and N>=128 MXU path.
    for (B, N) in [(2, 16), (4, 128)]:
        kDi, kS, kV, kHtx, kHtH, kData = jax.random.split(kData, 6)

        Di = jax.random.normal(kDi, (B, N, N), dtype=jnp.float32)
        s = jax.random.normal(kS, (B, N, 1), dtype=jnp.float32)
        v = jax.random.normal(kV, (B, N, 1), dtype=jnp.float32)
        Htx = jax.random.normal(kHtx, (B, N, 1), dtype=jnp.float32)
        HtH = jax.random.normal(kHtH, (B, N, N), dtype=jnp.float32)

        s_out, v_out = xv_forward(Di, s, v, Htx, HtH, alpha1, alpha2)
        jax.block_until_ready((s_out, v_out))

        s_ref, v_ref = xv_reference(Di, s, v, Htx, HtH, alpha1, alpha2)
        assert s_out.shape == (B, N, 1) and v_out.shape == (B, N, 1)
        tol = 2e-3 if N >= 128 else 1e-4
        assert jnp.allclose(s_out, s_ref, atol=tol, rtol=tol), ("s", B, N)
        assert jnp.allclose(v_out, v_ref, atol=tol, rtol=tol), ("v", B, N)

    print("KERNEL_OK")
</pallas_src>

<mosaic_0001>
module attributes {stable_mosaic.version = 11 : i64} {
  func.func @kernel(%arg0: i32, %arg1: memref<2xf32, #tpu.memory_space<smem>>, %arg2: memref<2x16x16xf32, #tpu.memory_space<vmem>>, %arg3: memref<2x16xf32, #tpu.memory_space<vmem>>, %arg4: memref<2x16xf32, #tpu.memory_space<vmem>>, %arg5: memref<2x16xf32, #tpu.memory_space<vmem>>, %arg6: memref<2x16x16xf32, #tpu.memory_space<vmem>>, %arg7: memref<2x16xf32, #tpu.memory_space<vmem>>, %arg8: memref<2x16xf32, #tpu.memory_space<vmem>>) attributes {dimension_semantics = [#tpu.dimension_semantics<parallel>], iteration_bounds = array<i64: 1>, scalar_prefetch = 1 : i64, scratch_operands = 0 : i64, tpu.core_type = #tpu.core_type<tc>, window_params = [{transform_indices = @transform_0, window_bounds = array<i64: 2, 16, 16>}, {transform_indices = @transform_1, window_bounds = array<i64: 2, 16>}, {transform_indices = @transform_2, window_bounds = array<i64: 2, 16>}, {transform_indices = @transform_3, window_bounds = array<i64: 2, 16>}, {transform_indices = @transform_4, window_bounds = array<i64: 2, 16, 16>}, {transform_indices = @transform_5, window_bounds = array<i64: 2, 16>}, {transform_indices = @transform_6, window_bounds = array<i64: 2, 16>}]} {
    %c0 = arith.constant 0 : index
    %0 = memref.load %arg1[%c0] : memref<2xf32, #tpu.memory_space<smem>>
    %c1 = arith.constant 1 : index
    %1 = memref.load %arg1[%c1] : memref<2xf32, #tpu.memory_space<smem>>
    %c0_0 = arith.constant 0 : index
    %c0_1 = arith.constant 0 : index
    %2 = vector.load %arg3[%c0_0, %c0_1] : memref<2x16xf32, #tpu.memory_space<vmem>>, vector<2x16xf32>
    %c0_2 = arith.constant 0 : index
    %c0_3 = arith.constant 0 : index
    %3 = vector.load %arg4[%c0_2, %c0_3] : memref<2x16xf32, #tpu.memory_space<vmem>>, vector<2x16xf32>
    %c0_4 = arith.constant 0 : index
    %c0_5 = arith.constant 0 : index
    %4 = vector.load %arg5[%c0_4, %c0_5] : memref<2x16xf32, #tpu.memory_space<vmem>>, vector<2x16xf32>
    %c0_6 = arith.constant 0 : index
    %c0_7 = arith.constant 0 : index
    %c0_8 = arith.constant 0 : index
    %5 = vector.load %arg6[%c0_6, %c0_7, %c0_8] : memref<2x16x16xf32, #tpu.memory_space<vmem>>, vector<2x16x16xf32>
    %c0_9 = arith.constant 0 : index
    %c0_10 = arith.constant 0 : index
    %c0_11 = arith.constant 0 : index
    %6 = vector.load %arg2[%c0_9, %c0_10, %c0_11] : memref<2x16x16xf32, #tpu.memory_space<vmem>>, vector<2x16x16xf32>
    %7 = vector.shape_cast %2 : vector<2x16xf32> to vector<2x1x16xf32>
    %8 = vector.broadcast %7 : vector<2x1x16xf32> to vector<2x16x16xf32>
    %9 = arith.mulf %5, %8 : vector<2x16x16xf32>
    %cst = arith.constant dense<0.000000e+00> : vector<2x16xf32>
    %10 = vector.multi_reduction <add>, %9, %cst [2] : vector<2x16x16xf32> to vector<2x16xf32>
    %11 = arith.subf %4, %10 : vector<2x16xf32>
    %12 = vector.shape_cast %11 : vector<2x16xf32> to vector<2x1x16xf32>
    %13 = vector.broadcast %12 : vector<2x1x16xf32> to vector<2x16x16xf32>
    %14 = arith.mulf %6, %13 : vector<2x16x16xf32>
    %cst_12 = arith.constant dense<0.000000e+00> : vector<2x16xf32>
    %15 = vector.multi_reduction <add>, %14, %cst_12 [2] : vector<2x16x16xf32> to vector<2x16xf32>
    %16 = arith.addf %2, %15 : vector<2x16xf32>
    %17 = vector.broadcast %0 : f32 to vector<2x16xf32>
    %18 = arith.mulf %17, %3 : vector<2x16xf32>
    %19 = arith.addf %16, %18 : vector<2x16xf32>
    %c0_13 = arith.constant 0 : index
    %c0_14 = arith.constant 0 : index
    %20 = vector.load %arg8[%c0_13, %c0_14] : memref<2x16xf32, #tpu.memory_space<vmem>>, vector<2x16xf32>
    tpu.vector_store %arg8[%c0_13, %c0_14], %15 {strides = array<i32>} : memref<2x16xf32, #tpu.memory_space<vmem>>, vector<2x16xf32>,
    %cst_15 = arith.constant 1.000000e+00 : f32
    %21 = arith.subf %cst_15, %1 : f32
    %22 = vector.broadcast %21 : f32 to vector<2x16xf32>
    %23 = arith.mulf %22, %19 : vector<2x16xf32>
    %24 = vector.broadcast %1 : f32 to vector<2x16xf32>
    %25 = arith.mulf %24, %2 : vector<2x16xf32>
    %26 = arith.addf %23, %25 : vector<2x16xf32>
    %c0_16 = arith.constant 0 : index
    %c0_17 = arith.constant 0 : index
    %27 = vector.load %arg7[%c0_16, %c0_17] : memref<2x16xf32, #tpu.memory_space<vmem>>, vector<2x16xf32>
    tpu.vector_store %arg7[%c0_16, %c0_17], %26 {strides = array<i32>} : memref<2x16xf32, #tpu.memory_space<vmem>>, vector<2x16xf32>,
    return
  }
  func.func @transform_0(%arg0: i32, %arg1: memref<2xf32, #tpu.memory_space<smem>>) -> (i32, i32, i32) {
    %c0_i32 = arith.constant 0 : i32
    %c0_i32_0 = arith.constant 0 : i32
    %c0_i32_1 = arith.constant 0 : i32
    return %arg0, %c0_i32, %c0_i32_0 : i32, i32, i32
  }
  func.func @transform_1(%arg0: i32, %arg1: memref<2xf32, #tpu.memory_space<smem>>) -> (i32, i32) {
    %c0_i32 = arith.constant 0 : i32
    %c0_i32_0 = arith.constant 0 : i32
    return %arg0, %c0_i32 : i32, i32
  }
  func.func @transform_2(%arg0: i32, %arg1: memref<2xf32, #tpu.memory_space<smem>>) -> (i32, i32) {
    %c0_i32 = arith.constant 0 : i32
    %c0_i32_0 = arith.constant 0 : i32
    return %arg0, %c0_i32 : i32, i32
  }
  func.func @transform_3(%arg0: i32, %arg1: memref<2xf32, #tpu.memory_space<smem>>) -> (i32, i32) {
    %c0_i32 = arith.constant 0 : i32
    %c0_i32_0 = arith.constant 0 : i32
    return %arg0, %c0_i32 : i32, i32
  }
  func.func @transform_4(%arg0: i32, %arg1: memref<2xf32, #tpu.memory_space<smem>>) -> (i32, i32, i32) {
    %c0_i32 = arith.constant 0 : i32
    %c0_i32_0 = arith.constant 0 : i32
    %c0_i32_1 = arith.constant 0 : i32
    return %arg0, %c0_i32, %c0_i32_0 : i32, i32, i32
  }
  func.func @transform_5(%arg0: i32, %arg1: memref<2xf32, #tpu.memory_space<smem>>) -> (i32, i32) {
    %c0_i32 = arith.constant 0 : i32
    %c0_i32_0 = arith.constant 0 : i32
    return %arg0, %c0_i32 : i32, i32
  }
  func.func @transform_6(%arg0: i32, %arg1: memref<2xf32, #tpu.memory_space<smem>>) -> (i32, i32) {
    %c0_i32 = arith.constant 0 : i32
    %c0_i32_0 = arith.constant 0 : i32
    return %arg0, %c0_i32 : i32, i32
  }
}

</mosaic_0001>

<bundles_post_ra>
// kernel: tpu_custom_call.1
= control target key start
LH: loop header
LB: loop body
LE: loop exit
PB: predicated region body
PF: predicated region fallthrough
CT: control target
= control target key end

     0   :  { %s406_s27 = smov [#allocation3]   ;;  %s501_s0 = inlined_call_operand.hbm [shape: f32[2], index: 0, kind: input, shape index: {}]   ;;  %s502_s1 = inlined_call_operand.hbm [shape: f32[2,16,16], index: 1, kind: input, shape index: {}]   ;;  %s503_s2 = inlined_call_operand.hbm [shape: f32[2,16], index: 2, kind: input, shape index: {}]   ;;  %s504_s3 = inlined_call_operand.vmem [shape: f32[2,16], index: 3, kind: input, shape index: {}]   ;;  %s505_s4 = inlined_call_operand.hbm [shape: f32[2,16], index: 4, kind: input, shape index: {}]   ;;  %s506_s5 = inlined_call_operand.hbm [shape: f32[2,16,16], index: 5, kind: input, shape index: {}]   ;;  %s507_s6 = inlined_call_operand.hbm [shape: f32[2,16], index: 6, kind: output, shape index: {0}]   ;;  %s508_s7 = inlined_call_operand.hbm [shape: f32[2,16], index: 7, kind: output, shape index: {1}]  }
   0x1   :  { %s14_s26 = sshll.u32 %s501_s0, 4  ;;  %s15_s26 = int_to_ptr.hbm [resolvable:$true] %s14_s26 }
   0x2   :  { %17 = dma.hbm_to_smem %s15_s26, 16, %s406_s27, [#allocation2] }
   0x3   :  { %394 = dma.done.wait [#allocation2], 16 }
   0x4   :  { %395 = vsyncadd [#allocation2], 4294967280 }
   0x5   :  { %20 = sfence }
   0x6   :  { %21 = vsyncpa [#allocation5], 0 }
   0x7   :  { %22 = vsyncpa [#allocation8], 0 }
   0x8   :  { %23 = vsyncpa [#allocation11], 0 }
   0x9   :  { %24 = vsyncpa [#allocation6], 0  ;;  %s44_s30 = sshll.u32 %s503_s2, 4  ;;  %s45_s30 = int_to_ptr.hbm [resolvable:$true] %s44_s30 }
   0xa   :  { %25 = vsyncpa [#allocation14], 0  ;;  %s407_s8 = smov [#allocation7]   ;;  %s30_s11 = sshll.u32 %s502_s1, 4  ;;  %s31_s11 = int_to_ptr.hbm [resolvable:$true] %s30_s11 }
   0xb   :  { %s46_s9 = sshll.u32 %s407_s8, 4  ;;  %s408_s12 = smov [#allocation4]   ;;  %s47_s9 = int_to_ptr.vmem [resolvable:$true] %s46_s9 }
   0xc   :  { %49 = dma.hbm_to_vmem [thread:$0]  %s45_s30, 32, %s47_s9, [#allocation8]  }
   0xd   :  { %s32_s13 = sshll.u32 %s408_s12, 4  ;;  %s409_s14 = smov 128   ;;  %s33_s13 = int_to_ptr.vmem [resolvable:$true] %s32_s13 }
   0xe   :  { %s410_s15 = smov 8   ;;  %s57_s2 = sshll.u32 %s505_s4, 4  ;;  %s58_s2 = int_to_ptr.hbm [resolvable:$true] %s57_s2 }
   0xf   :  { %38 = dma.hbm_to_vmem [thread:$0]  %s31_s11, 512, %s33_s13, [#allocation5], %s409_s14, %s409_s14, %s410_s15  }
  0x10   :  { %s411_s18 = smov [#allocation9]   ;;  %s67_s1 = sshll.u32 %s506_s5, 4  ;;  %s68_s1 = int_to_ptr.hbm [resolvable:$true] %s67_s1 }
  0x11   :  { %s59_s19 = sshll.u32 %s411_s18, 4  ;;  %s412_s22 = smov [#allocation10]   ;;  %s60_s19 = int_to_ptr.vmem [resolvable:$true] %s59_s19 }
  0x12   :  { %62 = dma.hbm_to_vmem [thread:$0]  %s58_s2, 32, %s60_s19, [#allocation8]  }
  0x13   :  { %s69_s23 = sshll.u32 %s412_s22, 4  ;;  %s70_s23 = int_to_ptr.vmem [resolvable:$true] %s69_s23 }
  0x14   :  { %75 = dma.hbm_to_vmem [thread:$0]  %s68_s1, 512, %s70_s23, [#allocation11], %s409_s14, %s409_s14, %s410_s15  }
  0x15   :  { %396 = dma.done.wait [#allocation5], 512  }
  0x16   :  { %397 = vsyncadd [#allocation5], 4294966784 }
  0x17   :  { %398 = dma.done.wait [#allocation8], 64  }
  0x18   :  { %399 = vsyncadd [#allocation8], 4294967232 }
  0x19   :  { %400 = dma.done.wait [#allocation11], 512  }
  0x1a   :  { %401 = vsyncadd [#allocation11], 4294966784  ;;  %v470_v0 = vld [vmem:[#allocation7] sm:$0x3]  ;;  %v97_v1 = vld [vmem:[#allocation10] sm:$0xff]  ;;  %vm115_vm0 = vcmask 130048   ;;  %v132_v16 = vlaneseq }
  0x1b   :  { %v107_v2 = vperm.slane %v470_v0, 0  ;;  %v106_v3 = vrot.slane %v470_v0, 1  ;;  %v99_v4 = vld [vmem:[#allocation10 + $0x10] sm:$0xff]  ;;  %v98_v7 = vld [vmem:[#allocation10 + $0x8] sm:$0xff]  ;;  %v100_v10 = vld [vmem:[#allocation10 + $0x18] sm:$0xff]  ;;  %vm137_vm1 = vcmask 130112  }
  0x1c   :  { %v133_v19 = vand.u32 127, %v132_v16  ;;  %vm142_vm2 = vcmask 1041409   ;;  %v96_v27 = vld [vmem:[#allocation9] sm:$0x3]  ;;  %v104_v35 = vld [vmem:[#allocation4 + $0x18] sm:$0xff]  ;;  %v103_v36 = vld [vmem:[#allocation4 + $0x10] sm:$0xff] }
  0x1d   :  { %v111_v5 = vmul.f32 %v107_v2, %v97_v1  ;;  %v108_v6 = vperm.slane %v106_v3, 0  ;;  %v112_v12 = vmul.f32 %v107_v2, %v98_v7  ;;  %v101_v32 = vld [vmem:[#allocation4] sm:$0xff]  ;;  %v102_v42 = vld [vmem:[#allocation4 + $0x8] sm:$0xff]  ;;  %s92_s4 = sld [smem:[#allocation3]]  ;;  %s413_s26 = smov [#allocation13]   ;;  %vm184_vm3 = vcmask 123904  }
  0x1e   :  { %v135_v20 = vadd.s32 4294967288, %v133_v19  ;;  %s228_s5 = sld [smem:[#allocation3 + $0x1]]  ;;  %v95_v52 = vld [vmem:[%s504_s3] sm:$0x3]  ;;  %s209_s27 = sshll.u32 %s413_s26, 4  ;;  %s210_s27 = int_to_ptr.vmem [resolvable:$true] %s209_s27 }
  0x1f   :  { %v116_v8 = vsel %vm115_vm0, %v111_v5, 0.0  ;;  %v113_v9 = vmul.f32 %v108_v6, %v99_v4  ;;  %v114_v13 = vmul.f32 %v108_v6, %v100_v10  ;;  %v119_v14 = vsel %vm115_vm0, %v112_v12, 0.0  ;;  %s211_s30 = sshll.u32 %s508_s7, 4  ;;  %s414_s3 = smov [#allocation12]   ;;  %s212_s30 = int_to_ptr.hbm [resolvable:$true] %s211_s30 }
  0x20   :  { %117 = vadd.xlane.f32.xlu0 %v116_v8  ;;  %s198_s7 = sshll.u32 %s414_s3, 4  ;;  %s200_s10 = sshll.u32 %s507_s6, 4  ;;  %s199_s7 = int_to_ptr.vmem [resolvable:$true] %s198_s7  ;;  %s201_s10 = int_to_ptr.hbm [resolvable:$true] %s200_s10 }
  0x21   :  { %v122_v11 = vsel %vm115_vm0, %v113_v9, 0.0  ;;  %v125_v15 = vsel %vm115_vm0, %v114_v13, 0.0 }
  0x22   :  { %123 = vadd.xlane.f32.xlu1 %v122_v11 }
  0x23   :  { %v181_v54 = vstv %s92_s4 }
  0x24   :  { %s186_s8 = ssub.f32 1.0, %s228_s5  ;;  %v182_v59 = vmul.f32 %v181_v54, %v95_v52  ;;  %v189_v61 = vstv %s228_s5 }
  0x25   :  { %v190_v2 = vmul.f32 %v189_v61, %v470_v0 }
  0x26   :  { %v187_v63 = vstv %s186_s8 }
  0x28   :  { %120 = vadd.xlane.f32.xlu0 %v119_v14 }
  0x2a   :  { %126 = vadd.xlane.f32.xlu1 %v125_v15 }
  0x93   :  { %v118_v17 = vpop.xlane.xlu0 %117 }
  0x94   :  { %v134_v24 = vperm.slane %v118_v17, %v133_v19 }
  0x95   :  { %v124_v18 = vpop.xlane.xlu1 %123 }
  0x96   :  { %v139_v25 = vperm.slane %v124_v18, %v133_v19 }
  0x9b   :  { %v121_v21 = vpop.xlane.xlu0 %120 }
  0x9c   :  { %v136_v22 = vperm.slane %v121_v21, %v135_v20 }
  0x9d   :  { %v127_v23 = vpop.xlane.xlu1 %126 }
  0x9e   :  { %v140_v26 = vperm.slane %v127_v23, %v135_v20  ;;  %v138_v28 = vsel %vm137_vm1, %v136_v22, %v134_v24 }
  0xa0   :  { %v141_v29 = vsel %vm137_vm1, %v140_v26, %v139_v25 }
  0xa1   :  { %v143_v30 = vsel %vm142_vm2, %v141_v29, %v138_v28 }
  0xa2   :  { %v145_v31 = vsub.f32 %v96_v27, %v143_v30 }
  0xa4   :  { %v148_v33 = vperm.slane %v145_v31, 0  ;;  %v147_v34 = vrot.slane %v145_v31, 1 }
  0xa6   :  { %v152_v37 = vmul.f32 %v148_v33, %v101_v32  ;;  %v149_v38 = vperm.slane %v147_v34, 0  ;;  %v153_v45 = vmul.f32 %v148_v33, %v102_v42 }
  0xa8   :  { %v156_v39 = vsel %vm115_vm0, %v152_v37, 0.0  ;;  %v155_v40 = vmul.f32 %v149_v38, %v104_v35  ;;  %v154_v41 = vmul.f32 %v149_v38, %v103_v36  ;;  %v159_v46 = vsel %vm115_vm0, %v153_v45, 0.0 }
  0xa9   :  { %157 = vadd.xlane.f32.xlu2 %v156_v39 }
  0xaa   :  { %v165_v43 = vsel %vm115_vm0, %v155_v40, 0.0  ;;  %v162_v44 = vsel %vm115_vm0, %v154_v41, 0.0 }
  0xab   :  { %166 = vadd.xlane.f32.xlu1 %v165_v43  ;;  %163 = vadd.xlane.f32.xlu0 %v162_v44 }
  0xb1   :  { %160 = vadd.xlane.f32.xlu2 %v159_v46 }
 0x11c   :  { %v158_v47 = vpop.xlane.xlu2 %157 }
 0x11d   :  { %v172_v55 = vperm.slane %v158_v47, %v133_v19 }
 0x11e   :  { %v167_v48 = vpop.xlane.xlu1 %166  ;;  %v164_v49 = vpop.xlane.xlu0 %163 }
 0x11f   :  { %v176_v50 = vperm.slane %v167_v48, %v135_v20  ;;  %v175_v51 = vperm.slane %v164_v49, %v133_v19 }
 0x121   :  { %v177_v57 = vsel %vm137_vm1, %v176_v50, %v175_v51 }
 0x124   :  { %v161_v53 = vpop.xlane.xlu2 %160 }
 0x125   :  { %v173_v56 = vperm.slane %v161_v53, %v135_v20 }
 0x127   :  { %v174_v58 = vsel %vm137_vm1, %v173_v56, %v172_v55 }
 0x128   :  { %v178_v60 = vsel %vm142_vm2, %v177_v57, %v174_v58 }
 0x129   :  { %v180_v62 = vadd.f32 %v178_v60, %v470_v0  ;;  %185 = vst.msk [vmem:[#allocation13] sm:$0x3] %vm184_vm3, %v178_v60 }
 0x12a   :  { %214 = dma.vmem_to_hbm [thread:$0]  %s210_s27, 32, %s212_s30, [#allocation14]  }
 0x12b   :  { %v183_v1 = vadd.f32 %v182_v59, %v180_v62 }
 0x12d   :  { %v188_v3 = vmul.f32 %v187_v63, %v183_v1 }
 0x12f   :  { %v191_v4 = vadd.f32 %v190_v2, %v188_v3 }
 0x131   :  { %192 = vst.msk [vmem:[#allocation12] sm:$0x3] %vm184_vm3, %v191_v4 }
 0x132   :  { %203 = dma.vmem_to_hbm [thread:$0]  %s199_s7, 32, %s201_s10, [#allocation6]  }
 0x133   :  { %402 = dma.done.wait [#allocation6], 32  }
 0x134   :  { %403 = vsyncadd [#allocation6], 4294967264 }
 0x135   :  { %404 = dma.done.wait [#allocation14], 32  }
 0x136   :  { %405 = vsyncadd [#allocation14], 4294967264 }
 0x137   :  { %223 = vsyncpa [#allocation5], 1 }
 0x138   :  { %224 = vsyncpa [#allocation8], 1 }
 0x139   :  { %225 = vsyncpa [#allocation11], 1 }
 0x13a   :  { %226 = vsyncpa [#allocation6], 1 }
 0x13b   :  { %227 = vsyncpa [#allocation14], 1 }

</bundles_post_ra>
